<compile_context>
chip_gen: v7x
topology: tpu7x:2x2x1
jax: 0.10.0
libtpu: 0.0.40
codegen_flags: <defaults>
</compile_context>

<pallas_src>
import jax
import jax.numpy as jnp
import numpy as np
from jax.experimental import pallas as pl
from jax.experimental.pallas import tpu as pltpu


def _round_up(x, m):
    return ((x + m - 1) // m) * m


def _pad2d(x, rows, cols):
    r, c = x.shape
    if (r, c) == (rows, cols):
        return x
    return jnp.pad(x, ((0, rows - r), (0, cols - c)))


def _tile_for(dim, max_tile, gran=256):
    """Tile size for `dim`: whole (128-padded) dim if it fits one tile,
    otherwise balanced tiles rounded to `gran` (256 = v6e/v7x MXU edge)."""
    full = _round_up(dim, 128)
    if full <= max_tile:
        return full
    n_tiles = -(-full // max_tile)            # ceil
    return _round_up(-(-full // n_tiles), gran)


# ----------------------------------------------------------------------------
# i2s_layer:  d_node[dst] = sum over i2d edges (src -> dst) of i_node[src]
#             == A @ H  with A the dense 0/1 (n_d x n_i) incidence matrix.
# Tiled K-last matmul on the MXU; bf16 operands, f32 accumulation directly
# into the resident output block.
# ----------------------------------------------------------------------------
def _i2d_matmul_kernel(adj_ref, hi_ref, lo_ref, out_ref):
    k = pl.program_id(2)

    @pl.when(k == 0)
    def _():
        out_ref[...] = jnp.zeros_like(out_ref)

    # Two native-rate bf16 MXU matmuls; products of a 0/1 bf16 adjacency with
    # bf16 features are exact in the f32 accumulator, so the only error is the
    # ~2^-16-relative hi/lo representation error of the features.
    adj = adj_ref[...]
    out_ref[...] += (
        jnp.dot(adj, hi_ref[...], preferred_element_type=jnp.float32)
        + jnp.dot(adj, lo_ref[...], preferred_element_type=jnp.float32)
    )


def i2d_aggregate(adj, i_node, *, tm_max=512, tk_max=2048, tn_max=1024,
                  check_binary=False):
    """adj: [n_d, n_i] 0/1 incidence;  i_node: [n_i, F] float32 -> [n_d, F] f32."""
    n_d, n_i = adj.shape
    n_i2, f = i_node.shape
    assert n_i == n_i2, "adjacency / feature shape mismatch"

    if check_binary:
        # bf16 storage of the adjacency is lossless only for 0/1 incidence
        # (which is what dgl copy_u + sum implies). Weighted edges would need
        # their own hi/lo split.
        assert bool(jnp.all((adj == 0) | (adj == 1))), "i2d adjacency must be 0/1"

    tm = _tile_for(n_d, tm_max)
    tk = _tile_for(n_i, tk_max)
    f_pad = _round_up(f, 128)
    # Full feature width in one tile when it fits: adjacency streamed once.
    tn = f_pad if f_pad <= tn_max else _tile_for(f, tn_max)

    M = _round_up(n_d, tm)
    K = _round_up(n_i, tk)
    N = _round_up(f, tn)

    # v7x has 2 TensorCores per chip: if the parallel grid collapsed to a
    # single (M,N) tile on a big problem, halve tm so both cores get work
    # (harmless on single-TC v5e/v6e).
    if (M // tm) * (N // tn) < 2 and tm >= 512:
        tm = _round_up(tm // 2, 256)
        M = _round_up(n_d, tm)

    grid_m, grid_n, grid_k = M // tm, N // tn, K // tk

    # bf16 hi/lo split of the features: A @ x == A @ hi + A @ lo to ~f32
    # accuracy while running at the bf16 MXU rate.
    hi = i_node.astype(jnp.bfloat16)
    lo = (i_node - hi.astype(jnp.float32)).astype(jnp.bfloat16)

    adj_p = _pad2d(adj.astype(jnp.bfloat16), M, K)   # 0/1 -> bf16 is lossless
    hi_p = _pad2d(hi, K, N)
    lo_p = _pad2d(lo, K, N)

    cost = pl.CostEstimate(
        flops=4 * M * K * N,                    # two bf16 matmuls
        transcendentals=0,
        bytes_accessed=(M * K * 2) * grid_n     # adjacency re-read per N tile
        + (K * N * 4) * grid_m                  # hi+lo (2 x bf16) per M tile
        + M * N * 4,                            # f32 output written once
    )

    out = pl.pallas_call(
        _i2d_matmul_kernel,
        out_shape=jax.ShapeDtypeStruct((M, N), jnp.float32),
        grid=(grid_m, grid_n, grid_k),
        in_specs=[
            # TODO(synk): for block-structured sparsity, upgrade to a
            # scalar-prefetched block-CSR index_map so all-zero adjacency
            # tiles are never DMA'd; a per-block skip saves nothing for
            # unstructured sparsity so it was removed.
            pl.BlockSpec((tm, tk), lambda i, j, k: (i, k)),
            pl.BlockSpec((tk, tn), lambda i, j, k: (k, j)),
            pl.BlockSpec((tk, tn), lambda i, j, k: (k, j)),
        ],
        out_specs=pl.BlockSpec((tm, tn), lambda i, j, k: (i, j)),
        compiler_params=pltpu.CompilerParams(
            dimension_semantics=("parallel", "parallel", "arbitrary"),
            # Worst-case double-buffered tile set (tm=512, tk=2048, tn=1024)
            # is ~24 MiB; 48 MiB leaves headroom yet stays inside v7x's
            # 64 MiB physical VMEM (v5e/v6e have 128 MiB).
            vmem_limit_bytes=48 * 1024 * 1024,
        ),
        cost_estimate=cost,
    )(adj_p, hi_p, lo_p)

    return out[:n_d, :f]


# ----------------------------------------------------------------------------
# r2i_layer:  i_node + r_node   (elementwise add, tiled over rows and columns)
# ----------------------------------------------------------------------------
def _r2i_add_kernel(r_ref, i_ref, out_ref):
    out_ref[...] = i_ref[...] + r_ref[...]


def r2i_add(r_node, i_node, *, block_rows=512, block_cols=1024):
    assert r_node.shape == i_node.shape, "r2i_layer requires matching shapes"
    n, f = i_node.shape
    br = min(block_rows, _round_up(n, 8))
    bc = min(block_cols, _round_up(f, 128))
    n_pad = _round_up(n, br)
    f_pad = _round_up(f, bc)
    r_p = _pad2d(r_node.astype(jnp.float32), n_pad, f_pad)
    i_p = _pad2d(i_node.astype(jnp.float32), n_pad, f_pad)
    out = pl.pallas_call(
        _r2i_add_kernel,
        out_shape=jax.ShapeDtypeStruct((n_pad, f_pad), jnp.float32),
        grid=(n_pad // br, f_pad // bc),
        in_specs=[
            pl.BlockSpec((br, bc), lambda i, j: (i, j)),
            pl.BlockSpec((br, bc), lambda i, j: (i, j)),
        ],
        out_specs=pl.BlockSpec((br, bc), lambda i, j: (i, j)),
        compiler_params=pltpu.CompilerParams(
            dimension_semantics=("parallel", "parallel"),
        ),
    )(r_p, i_p)
    return out[:n, :f]


# ----------------------------------------------------------------------------
# ISATconvolution forward wiring (JAX/Pallas version)
# ----------------------------------------------------------------------------
class ISATconvolutionPallas:
    def __init__(self, in_node_feats, in_edge_feats, out_feats, n_layers,
                 dropout=0.2, batch_norm=False, residual_sum=False,
                 alpha=0.1, max_dist=4):
        # TODO(synk): MPNN_layer (r2r), GAT_layer (i2i), distGCN_layer (d2d) and
        # SumPooling source code was not provided, so no parameters are created
        # for them and they are applied as identity passthroughs below.
        self.in_node_feats = in_node_feats
        self.in_edge_feats = in_edge_feats
        self.out_feats = out_feats
        self.n_layers = n_layers

    def __call__(self, adj_i2d, r_node, r2r_edge, i_node, d2d_edge):
        # r2r / i2i message-passing stack
        for _ in range(self.n_layers):
            r_node = r_node  # TODO(synk): MPNN_layer forward unavailable (identity)
            i_node = i_node  # TODO(synk): GAT_layer forward unavailable (identity)
        # i2d: exact i2s_layer semantics (copy_u + sum over i2d edges), Pallas matmul
        d_node1 = i2d_aggregate(adj_i2d, i_node)
        # d2d
        d_node2 = d_node1    # TODO(synk): distGCN_layer forward unavailable (identity)
        return r_node, d_node1, d_node2


if __name__ == "__main__":
    key = jax.random.PRNGKey(0)
    k_r, k_i, k_a, k_er, k_ed, k_i2, k_a2 = jax.random.split(key, 7)

    # Small synthetic graph:
    n_r = 64          # number of 'r_nd' nodes (== n_i so r2i_layer shapes match)
    n_i = 64          # number of 'i_nd' nodes
    n_d = 32          # number of 'd_nd' nodes
    feats = 128       # in_node_feats == out_feats
    in_edge_feats = 8
    n_layers = 2

    r_node = jax.random.normal(k_r, (n_r, feats), dtype=jnp.float32)
    i_node = jax.random.normal(k_i, (n_i, feats), dtype=jnp.float32)
    # dense 0/1 adjacency for the ('i_nd','i2d','d_nd') edges
    adj_i2d = (jax.random.uniform(k_a, (n_d, n_i)) < 0.2).astype(jnp.float32)
    r2r_edge = jax.random.normal(k_er, (4 * n_r, in_edge_feats), dtype=jnp.float32)
    d2d_edge = jax.random.normal(k_ed, (2 * n_d, 1), dtype=jnp.float32)

    model = ISATconvolutionPallas(feats, in_edge_feats, feats, n_layers)
    r_out, d1_out, d2_out = model(adj_i2d, r_node, r2r_edge, i_node, d2d_edge)
    jax.block_until_ready((r_out, d1_out, d2_out))

    # reference check for the i2s_layer hot path; the bf16 hi/lo split keeps
    # the error around 1e-4 absolute (vs ~1e-2 for a plain bf16 matmul).
    d1_ref = np.asarray(adj_i2d) @ np.asarray(i_node)
    assert d1_out.shape == (n_d, feats)
    assert np.allclose(np.asarray(d1_out), d1_ref, rtol=3e-4, atol=3e-4)
    assert np.allclose(np.asarray(d2_out), d1_ref, rtol=3e-4, atol=3e-4)
    assert np.allclose(np.asarray(r_out), np.asarray(r_node))

    # second, non-(8,128)-aligned case to exercise padding / tile clamping
    i_node2 = jax.random.normal(k_i2, (300, 192), dtype=jnp.float32)
    adj2 = (jax.random.uniform(k_a2, (200, 300)) < 0.15).astype(jnp.float32)
    d2 = jax.block_until_ready(i2d_aggregate(adj2, i_node2, check_binary=True))
    d2_ref = np.asarray(adj2) @ np.asarray(i_node2)
    assert d2.shape == (200, 192)
    assert np.allclose(np.asarray(d2), d2_ref, rtol=3e-4, atol=5e-4)

    # r2i_layer (defined in the module but not used in forward): i_node + r_node
    ri = jax.block_until_ready(r2i_add(r_node, i_node))
    assert np.allclose(np.asarray(ri), np.asarray(i_node + r_node), rtol=1e-6, atol=1e-6)

    print("KERNEL_OK")
</pallas_src>

<mosaic_0001>
module attributes {stable_mosaic.version = 11 : i64} {
  func.func @_i2d_matmul_kernel(%arg0: i32, %arg1: i32, %arg2: i32, %arg3: memref<128x128xbf16, #tpu.memory_space<vmem>>, %arg4: memref<128x128xbf16, #tpu.memory_space<vmem>>, %arg5: memref<128x128xbf16, #tpu.memory_space<vmem>>, %arg6: memref<128x128xf32, #tpu.memory_space<vmem>>) attributes {dimension_semantics = [#tpu.dimension_semantics<parallel>, #tpu.dimension_semantics<parallel>, #tpu.dimension_semantics<arbitrary>], iteration_bounds = array<i64: 1, 1, 1>, scalar_prefetch = 0 : i64, scratch_operands = 0 : i64, tpu.core_type = #tpu.core_type<tc>, window_params = [{transform_indices = @transform_0, window_bounds = array<i64: 128, 128>}, {transform_indices = @transform_1, window_bounds = array<i64: 128, 128>}, {transform_indices = @transform_2, window_bounds = array<i64: 128, 128>}, {transform_indices = @transform_3, window_bounds = array<i64: 128, 128>}]} {
    %c0_i32 = arith.constant 0 : i32
    %0 = arith.cmpi eq, %arg2, %c0_i32 : i32
    %1 = arith.extui %0 : i1 to i32
    %c0_i32_0 = arith.constant 0 : i32
    %2 = arith.cmpi ne, %1, %c0_i32_0 : i32
    scf.if %2 {
      %cst_11 = arith.constant 0.000000e+00 : f32
      %12 = vector.broadcast %cst_11 : f32 to vector<128x128xf32>
      %c0_12 = arith.constant 0 : index
      %c0_13 = arith.constant 0 : index
      %13 = vector.load %arg6[%c0_12, %c0_13] : memref<128x128xf32, #tpu.memory_space<vmem>>, vector<128x128xf32>
      tpu.vector_store %arg6[%c0_12, %c0_13], %12 {strides = array<i32>} : memref<128x128xf32, #tpu.memory_space<vmem>>, vector<128x128xf32>,
    } else {
    }
    %c0 = arith.constant 0 : index
    %c0_1 = arith.constant 0 : index
    %3 = vector.load %arg3[%c0, %c0_1] : memref<128x128xbf16, #tpu.memory_space<vmem>>, vector<128x128xbf16>
    %c0_2 = arith.constant 0 : index
    %c0_3 = arith.constant 0 : index
    %4 = vector.load %arg6[%c0_2, %c0_3] : memref<128x128xf32, #tpu.memory_space<vmem>>, vector<128x128xf32>
    %c0_4 = arith.constant 0 : index
    %c0_5 = arith.constant 0 : index
    %5 = vector.load %arg4[%c0_4, %c0_5] : memref<128x128xbf16, #tpu.memory_space<vmem>>, vector<128x128xbf16>
    %cst = arith.constant dense<0.000000e+00> : vector<128x128xf32>
    %6 = tpu.matmul %3, %5, %cst {dimension_numbers = #tpu.dot_dimension_numbers<[1], [0], [0], [1], [0, 0, 1, 1], [], []>} : vector<128x128xbf16>, vector<128x128xbf16>, vector<128x128xf32> -> vector<128x128xf32>
    %c0_6 = arith.constant 0 : index
    %c0_7 = arith.constant 0 : index
    %7 = vector.load %arg5[%c0_6, %c0_7] : memref<128x128xbf16, #tpu.memory_space<vmem>>, vector<128x128xbf16>
    %cst_8 = arith.constant dense<0.000000e+00> : vector<128x128xf32>
    %8 = tpu.matmul %3, %7, %cst_8 {dimension_numbers = #tpu.dot_dimension_numbers<[1], [0], [0], [1], [0, 0, 1, 1], [], []>} : vector<128x128xbf16>, vector<128x128xbf16>, vector<128x128xf32> -> vector<128x128xf32>
    %9 = arith.addf %6, %8 : vector<128x128xf32>
    %10 = arith.addf %4, %9 : vector<128x128xf32>
    %c0_9 = arith.constant 0 : index
    %c0_10 = arith.constant 0 : index
    %11 = vector.load %arg6[%c0_9, %c0_10] : memref<128x128xf32, #tpu.memory_space<vmem>>, vector<128x128xf32>
    tpu.vector_store %arg6[%c0_9, %c0_10], %10 {strides = array<i32>} : memref<128x128xf32, #tpu.memory_space<vmem>>, vector<128x128xf32>,
    return
  }
  func.func @transform_0(%arg0: i32, %arg1: i32, %arg2: i32) -> (i32, i32) {
    %c0_i32 = arith.constant 0 : i32
    return %arg0, %arg2 : i32, i32
  }
  func.func @transform_1(%arg0: i32, %arg1: i32, %arg2: i32) -> (i32, i32) {
    %c0_i32 = arith.constant 0 : i32
    return %arg2, %arg1 : i32, i32
  }
  func.func @transform_2(%arg0: i32, %arg1: i32, %arg2: i32) -> (i32, i32) {
    %c0_i32 = arith.constant 0 : i32
    return %arg2, %arg1 : i32, i32
  }
  func.func @transform_3(%arg0: i32, %arg1: i32, %arg2: i32) -> (i32, i32) {
    %c0_i32 = arith.constant 0 : i32
    return %arg0, %arg1 : i32, i32
  }
}

</mosaic_0001>

<bundles_post_ra>
// kernel: tpu_custom_call.1
= control target key start
LH: loop header
LB: loop body
LE: loop exit
PB: predicated region body
PF: predicated region fallthrough
CT: control target
= control target key end

     0   :  { %8 = vsyncpa [#allocation3], 0  ;;  %s884_s0 = inlined_call_operand.hbm [shape: bf16[128,128], index: 0, kind: input, shape index: {}]   ;;  %s885_s1 = inlined_call_operand.hbm [shape: bf16[128,128], index: 1, kind: input, shape index: {}]   ;;  %s886_s2 = inlined_call_operand.hbm [shape: bf16[128,128], index: 2, kind: input, shape index: {}]   ;;  %s887_s3 = inlined_call_operand.hbm [shape: f32[128,128], index: 3, kind: output, shape index: {}]  }
   0x1   :  { %9 = vsyncpa [#allocation6], 0 }
   0x2   :  { %10 = vsyncpa [#allocation4], 0  ;;  %s792_s12 = smov [#allocation5]   ;;  %s793_s14 = smov [#allocation2]  }
   0x3   :  { %s28_s13 = sshll.u32 %s792_s12, 4  ;;  %s16_s15 = sshll.u32 %s793_s14, 4  ;;  %s29_s13 = int_to_ptr.vmem [resolvable:$true] %s28_s13  ;;  %s820_s15 = int_to_ptr.vmem [resolvable:$true] %s16_s15 }
   0x4   :  { %s698_s18 = scalar_lea.hbm %s885_s1, 1024 }
   0x5   :  { %p699_p0 = scmp.ne.s32.totalorder %s885_s1, %s698_s18  ;;  %p702_p1 = scmp.lt.u32.totalorder %s698_s18, %s885_s1 }
   0x7   :  { %p704_p2 = pnand %p702_p1, %p699_p0 }
   0x9   :  { %707 = shalt.err (!%p704_p2)
}
   0xa   :  { %s708_s23 = scalar_lea.vmem %s29_s13, 1024  ;;  %p713_p4 = scmp.lt.s32.totalorder %s29_s13, %s29_s13 }
   0xb   :  { %p709_p3 = scmp.ne.s32.totalorder %s29_s13, %s708_s23  ;;  %p714_p5 = scmp.lt.s32.totalorder %s708_s23, %s708_s23 }
   0xd   :  { %p715_p6 = por %p714_p5, %p713_p4 }
   0xf   :  { %p716_p7 = pnand %p715_p6, %p709_p3 }
  0x11   :  { %719 = shalt.err (!%p716_p7)
}
  0x12   :  { %s794_s24 = smov 64   ;;  %s795_s25 = smov 4  }
  0x13   :  { %34 = dma.hbm_to_vmem [thread:$0]  %s885_s1, 1024, %s29_s13, [#allocation6], %s794_s24, %s794_s24, %s795_s25  }
  0x14   :  { %s720_s30 = scalar_lea.hbm %s884_s0, 1024 }
  0x15   :  { %p721_p8 = scmp.ne.s32.totalorder %s884_s0, %s720_s30  ;;  %p724_p9 = scmp.lt.u32.totalorder %s720_s30, %s884_s0 }
  0x17   :  { %p726_p10 = pnand %p724_p9, %p721_p8 }
  0x19   :  { %729 = shalt.err (!%p726_p10)
}
  0x1a   :  { %s730_s8 = scalar_lea.vmem %s820_s15, 1024  ;;  %p735_p12 = scmp.lt.s32.totalorder %s820_s15, %s820_s15 }
  0x1b   :  { %p731_p11 = scmp.ne.s32.totalorder %s820_s15, %s730_s8  ;;  %p736_p13 = scmp.lt.s32.totalorder %s730_s8, %s730_s8 }
  0x1d   :  { %p737_p0 = por %p736_p13, %p735_p12 }
  0x1f   :  { %p738_p1 = pnand %p737_p0, %p731_p11 }
  0x21   :  { %741 = shalt.err (!%p738_p1)
}
  0x22   :  { %22 = dma.hbm_to_vmem [thread:$0]  %s884_s0, 1024, %s820_s15, [#allocation3], %s794_s24, %s794_s24, %s795_s25  }
  0x23   :  { %s796_s10 = smov [#allocation7]   ;;  %s742_s14 = scalar_lea.hbm %s886_s2, 1024 }
  0x24   :  { %s40_s11 = sshll.u32 %s796_s10, 4  ;;  %p743_p2 = scmp.ne.s32.totalorder %s886_s2, %s742_s14  ;;  %s41_s11 = int_to_ptr.vmem [resolvable:$true] %s40_s11 }
  0x25   :  { %p746_p3 = scmp.lt.u32.totalorder %s742_s14, %s886_s2 }
  0x27   :  { %p748_p4 = pnand %p746_p3, %p743_p2 }
  0x29   :  { %751 = shalt.err (!%p748_p4)
}
  0x2a   :  { %s752_s20 = scalar_lea.vmem %s41_s11, 1024  ;;  %p757_p6 = scmp.lt.s32.totalorder %s41_s11, %s41_s11 }
  0x2b   :  { %p753_p5 = scmp.ne.s32.totalorder %s41_s11, %s752_s20  ;;  %p758_p7 = scmp.lt.s32.totalorder %s752_s20, %s752_s20 }
  0x2d   :  { %p759_p8 = por %p758_p7, %p757_p6 }
  0x2f   :  { %p760_p9 = pnand %p759_p8, %p753_p5 }
  0x31   :  { %763 = shalt.err (!%p760_p9)
}
  0x32   :  { %46 = dma.hbm_to_vmem [thread:$0]  %s886_s2, 1024, %s41_s11, [#allocation6], %s794_s24, %s794_s24, %s795_s25  }
  0x33   :  { %786 = dma.done.wait [#allocation3], 1024  }
  0x34   :  { %787 = vsyncadd [#allocation3], 4294966272 }
  0x35   :  { %788 = dma.done.wait [#allocation6], 2048  }
  0x36   :  { %789 = vsyncadd [#allocation6], 4294965248  ;;  %v674_v0 = vld [vmem:[#allocation7] sm:$0xff]   ;;  %v676_v2 = vld [vmem:[#allocation7 + $0x8] sm:$0xff]   ;;  %s797_s2 = smov [#allocation8]  }
  0x37   :  { %v675_v1 = vld [vmem:[#allocation5] sm:$0xff]   ;;  %585 = vmatprep.subr.bf16.mxu1 %v674_v0  ;;  %v677_v3 = vld [vmem:[#allocation5 + $0x8] sm:$0xff]   ;;  %v678_v4 = vld [vmem:[#allocation7 + $0x10] sm:$0xff]   ;;  %s516_s21 = sshll.u32 %s797_s2, 4  ;;  %s517_s21 = int_to_ptr.vmem [resolvable:$true] %s516_s21 }
  0x38   :  { %617 = vmatprep.subr.bf16.mxu0 %v675_v1  ;;  %586 = vmatpush3.bf16.msra.mxu1 %v674_v0  ;;  %v679_v5 = vld [vmem:[#allocation5 + $0x10] sm:$0xff]   ;;  %v680_v6 = vld [vmem:[#allocation7 + $0x18] sm:$0xff]   ;;  %v682_v8 = vld [vmem:[#allocation7 + $0x20] sm:$0xff]   ;;  %s764_s22 = scalar_lea.vmem %s517_s21, 2048  ;;  %p769_p11 = scmp.lt.s32.totalorder %s517_s21, %s517_s21 }
  0x39   :  { %618 = vmatpush3.bf16.msra.mxu0 %v675_v1  ;;  %587 = vmatprep.subr.bf16.mxu1 %v676_v2  ;;  %v681_v7 = vld [vmem:[#allocation5 + $0x18] sm:$0xff]   ;;  %v683_v9 = vld [vmem:[#allocation5 + $0x20] sm:$0xff]   ;;  %v684_v10 = vld [vmem:[#allocation7 + $0x28] sm:$0xff]   ;;  %p765_p10 = scmp.ne.s32.totalorder %s517_s21, %s764_s22  ;;  %p770_p12 = scmp.lt.s32.totalorder %s764_s22, %s764_s22 }
  0x3a   :  { %619 = vmatprep.subr.bf16.mxu0 %v677_v3  ;;  %v690_v11 = vld [vmem:[#allocation2] sm:$0xff]   ;;  %v685_v12 = vld [vmem:[#allocation5 + $0x28] sm:$0xff]   ;;  %v686_v13 = vld [vmem:[#allocation7 + $0x30] sm:$0xff]  }
  0x3b   :  { %601 = vmatprep.mubr.bf16.mxu1 %v690_v11  ;;  %633 = vmatprep.mubr.bf16.mxu0 %v690_v11  ;;  %v687_v14 = vld [vmem:[#allocation5 + $0x30] sm:$0xff]   ;;  %v688_v15 = vld [vmem:[#allocation7 + $0x38] sm:$0xff]   ;;  %v691_v17 = vld [vmem:[#allocation2 + $0x8] sm:$0xff]   ;;  %p771_p13 = por %p770_p12, %p769_p11 }
  0x3c   :  { %588 = vmatpush3.bf16.msra.mxu1 %v676_v2  ;;  %v689_v16 = vld [vmem:[#allocation5 + $0x38] sm:$0xff]   ;;  %v692_v18 = vld [vmem:[#allocation2 + $0x10] sm:$0xff]   ;;  %v694_v20 = vld [vmem:[#allocation2 + $0x20] sm:$0xff]  }
  0x3d   :  { %620 = vmatpush3.bf16.msra.mxu0 %v677_v3  ;;  %589 = vmatprep.subr.bf16.mxu1 %v678_v4  ;;  %v693_v19 = vld [vmem:[#allocation2 + $0x18] sm:$0xff]   ;;  %v695_v21 = vld [vmem:[#allocation2 + $0x28] sm:$0xff]   ;;  %v696_v22 = vld [vmem:[#allocation2 + $0x30] sm:$0xff]   ;;  %p772_p0 = pnand %p771_p13, %p765_p10 }
  0x3e   :  { %621 = vmatprep.subr.bf16.mxu0 %v679_v5  ;;  %v697_v23 = vld [vmem:[#allocation2 + $0x38] sm:$0xff]  }
  0x40   :  { %590 = vmatpush3.bf16.msra.mxu1 %v678_v4 }
  0x41   :  { %622 = vmatpush3.bf16.msra.mxu0 %v679_v5  ;;  %591 = vmatprep.subr.bf16.mxu1 %v680_v6 }
  0x42   :  { %623 = vmatprep.subr.bf16.mxu0 %v681_v7 }
  0x44   :  { %592 = vmatpush3.bf16.msra.mxu1 %v680_v6 }
  0x45   :  { %624 = vmatpush3.bf16.msra.mxu0 %v681_v7  ;;  %593 = vmatprep.subr.bf16.mxu1 %v682_v8 }
  0x46   :  { %625 = vmatprep.subr.bf16.mxu0 %v683_v9 }
  0x48   :  { %594 = vmatpush3.bf16.msra.mxu1 %v682_v8 }
  0x49   :  { %626 = vmatpush3.bf16.msra.mxu0 %v683_v9  ;;  %595 = vmatprep.subr.bf16.mxu1 %v684_v10 }
  0x4a   :  { %627 = vmatprep.subr.bf16.mxu0 %v685_v12 }
  0x4c   :  { %596 = vmatpush3.bf16.msra.mxu1 %v684_v10 }
  0x4d   :  { %628 = vmatpush3.bf16.msra.mxu0 %v685_v12  ;;  %597 = vmatprep.subr.bf16.mxu1 %v686_v13 }
  0x4e   :  { %629 = vmatprep.subr.bf16.mxu0 %v687_v14 }
  0x50   :  { %598 = vmatpush3.bf16.msra.mxu1 %v686_v13 }
  0x51   :  { %630 = vmatpush3.bf16.msra.mxu0 %v687_v14  ;;  %599 = vmatprep.subr.bf16.mxu1 %v688_v15 }
  0x52   :  { %631 = vmatprep.subr.bf16.mxu0 %v689_v16 }
  0x54   :  { %600 = vmatpush3.bf16.msra.mxu1 %v688_v15 }
  0x55   :  { %632 = vmatpush3.bf16.msra.mxu0 %v689_v16 }
  0x57   :  { %602 = vmatmul.mubr.bf16.vlgmr.msra.gmra.mrb[0].mxu1 %v691_v17 }
  0x58   :  { %634 = vmatmul.mubr.bf16.vlgmr.msra.gmra.mrb[0].mxu0 %v691_v17  ;;  %605 = vmatprep.mubr.bf16.mxu1 %v692_v18 }
  0x59   :  { %637 = vmatprep.mubr.bf16.mxu0 %v692_v18 }
  0x5f   :  { %606 = vmatmul.mubr.bf16.gmra.mrb[4].mxu1 %v693_v19 }
  0x60   :  { %638 = vmatmul.mubr.bf16.gmra.mrb[4].mxu0 %v693_v19  ;;  %609 = vmatprep.mubr.bf16.mxu1 %v694_v20 }
  0x61   :  { %641 = vmatprep.mubr.bf16.mxu0 %v694_v20 }
  0x67   :  { %610 = vmatmul.mubr.bf16.gmra.mrb[8].mxu1 %v695_v21 }
  0x68   :  { %642 = vmatmul.mubr.bf16.gmra.mrb[8].mxu0 %v695_v21  ;;  %613 = vmatprep.mubr.bf16.mxu1 %v696_v22 }
  0x69   :  { %645 = vmatprep.mubr.bf16.mxu0 %v696_v22 }
  0x6f   :  { %614 = vmatmul.mubr.bf16.gmra.mrb[12].mxu1 %v697_v23 }
  0x70   :  { %646 = vmatmul.mubr.bf16.gmra.mrb[12].mxu0 %v697_v23 }
 0x12a   :  { %v603_v24 = vpop.f32.mrb[0].mxu1 }
 0x12b   :  { %v635_v25 = vpop.f32.mrb[0].mxu0  ;;  %v271_v26 = vpop.f32.mrb[1].mxu1 }
 0x12c   :  { %v425_v27 = vadd.f32 %v635_v25, %v603_v24  ;;  %v416_v28 = vpop.f32.mrb[1].mxu0  ;;  %v604_v29 = vpop.f32.mrb[2].mxu1 }
 0x12d   :  { %v417_v30 = vadd.f32 %v416_v28, %v271_v26  ;;  %v636_v31 = vpop.f32.mrb[2].mxu0  ;;  %v274_v32 = vpop.f32.mrb[3].mxu1 }
 0x12e   :  { %v428_v33 = vadd.f32 %v636_v31, %v604_v29  ;;  %v419_v34 = vpop.f32.mrb[3].mxu0  ;;  %497 = vst [vmem:[#allocation8 + $0x10] sm:$0xff] %v425_v27 }
 0x12f   :  { %v420_v35 = vadd.f32 %v419_v34, %v274_v32  ;;  %495 = vst [vmem:[#allocation8] sm:$0xff] %v417_v30 }
 0x130   :  { %498 = vst [vmem:[#allocation8 + $0x18] sm:$0xff] %v428_v33 }
 0x131   :  { %496 = vst [vmem:[#allocation8 + $0x8] sm:$0xff] %v420_v35 }
 0x132   :  { %v607_v36 = vpop.f32.mrb[4].mxu1 }
 0x133   :  { %v639_v37 = vpop.f32.mrb[4].mxu0  ;;  %v287_v38 = vpop.f32.mrb[5].mxu1 }
 0x134   :  { %v441_v39 = vadd.f32 %v639_v37, %v607_v36  ;;  %v432_v40 = vpop.f32.mrb[5].mxu0  ;;  %v608_v41 = vpop.f32.mrb[6].mxu1 }
 0x135   :  { %v433_v42 = vadd.f32 %v432_v40, %v287_v38  ;;  %v640_v43 = vpop.f32.mrb[6].mxu0  ;;  %v290_v44 = vpop.f32.mrb[7].mxu1 }
 0x136   :  { %v444_v45 = vadd.f32 %v640_v43, %v608_v41  ;;  %v435_v46 = vpop.f32.mrb[7].mxu0  ;;  %501 = vst [vmem:[#allocation8 + $0x30] sm:$0xff] %v441_v39 }
 0x137   :  { %v436_v47 = vadd.f32 %v435_v46, %v290_v44  ;;  %499 = vst [vmem:[#allocation8 + $0x20] sm:$0xff] %v433_v42 }
 0x138   :  { %502 = vst [vmem:[#allocation8 + $0x38] sm:$0xff] %v444_v45 }
 0x139   :  { %500 = vst [vmem:[#allocation8 + $0x28] sm:$0xff] %v436_v47 }
 0x13a   :  { %v611_v48 = vpop.f32.mrb[8].mxu1 }
 0x13b   :  { %v643_v49 = vpop.f32.mrb[8].mxu0  ;;  %v303_v50 = vpop.f32.mrb[9].mxu1 }
 0x13c   :  { %v457_v51 = vadd.f32 %v643_v49, %v611_v48  ;;  %v448_v52 = vpop.f32.mrb[9].mxu0  ;;  %v612_v53 = vpop.f32.mrb[10].mxu1 }
 0x13d   :  { %v449_v54 = vadd.f32 %v448_v52, %v303_v50  ;;  %v644_v55 = vpop.f32.mrb[10].mxu0  ;;  %v306_v56 = vpop.f32.mrb[11].mxu1 }
 0x13e   :  { %v460_v57 = vadd.f32 %v644_v55, %v612_v53  ;;  %v451_v58 = vpop.f32.mrb[11].mxu0  ;;  %505 = vst [vmem:[#allocation8 + $0x50] sm:$0xff] %v457_v51 }
 0x13f   :  { %v452_v59 = vadd.f32 %v451_v58, %v306_v56  ;;  %503 = vst [vmem:[#allocation8 + $0x40] sm:$0xff] %v449_v54 }
 0x140   :  { %506 = vst [vmem:[#allocation8 + $0x58] sm:$0xff] %v460_v57 }
 0x141   :  { %504 = vst [vmem:[#allocation8 + $0x48] sm:$0xff] %v452_v59 }
 0x142   :  { %v615_v60 = vpop.f32.mrb[12].mxu1 }
 0x143   :  { %v647_v61 = vpop.f32.mrb[12].mxu0  ;;  %v319_v62 = vpop.f32.mrb[13].mxu1 }
 0x144   :  { %v473_v63 = vadd.f32 %v647_v61, %v615_v60  ;;  %v464_v0 = vpop.f32.mrb[13].mxu0  ;;  %v616_v1 = vpop.f32.mrb[14].mxu1 }
 0x145   :  { %v465_v2 = vadd.f32 %v464_v0, %v319_v62  ;;  %v648_v3 = vpop.f32.mrb[14].mxu0  ;;  %v322_v4 = vpop.f32.mrb[15].mxu1 }
 0x146   :  { %v476_v5 = vadd.f32 %v648_v3, %v616_v1  ;;  %v467_v6 = vpop.f32.mrb[15].mxu0  ;;  %509 = vst [vmem:[#allocation8 + $0x70] sm:$0xff] %v473_v63 }
 0x147   :  { %v468_v7 = vadd.f32 %v467_v6, %v322_v4  ;;  %507 = vst [vmem:[#allocation8 + $0x60] sm:$0xff] %v465_v2 }
 0x148   :  { %510 = vst [vmem:[#allocation8 + $0x78] sm:$0xff] %v476_v5 }
 0x149   :  { %508 = vst [vmem:[#allocation8 + $0x68] sm:$0xff] %v468_v7 }
 0x14a   :  { %775 = shalt.err (!%p772_p0)
}
 0x14b   :  { %s776_s25 = scalar_lea.hbm %s887_s3, 2048 }
 0x14c   :  { %p777_p1 = scmp.ne.s32.totalorder %s887_s3, %s776_s25  ;;  %p780_p2 = scmp.lt.u32.totalorder %s776_s25, %s887_s3 }
 0x14e   :  { %p782_p3 = pnand %p780_p2, %p777_p1 }
 0x150   :  { %785 = shalt.err (!%p782_p3)
}
 0x151   :  { %s798_s30 = smov 128   ;;  %s799_s4 = smov 8  }
 0x152   :  { %522 = dma.vmem_to_hbm [thread:$0]  %s517_s21, 2048, %s887_s3, [#allocation4], %s798_s30, %s798_s30, %s799_s4  }
 0x153   :  { %790 = dma.done.wait [#allocation4], 2048  }
 0x154   :  { %791 = vsyncadd [#allocation4], 4294965248 }
 0x155   :  { %526 = vsyncpa [#allocation3], 1 }
 0x156   :  { %527 = vsyncpa [#allocation6], 1 }
 0x157   :  { %528 = vsyncpa [#allocation4], 1 }

</bundles_post_ra>
